<compile_context>
chip_gen: v5e
topology: v5e:2x2
jax: 0.10.0
libtpu: 0.0.40
codegen_flags: <defaults>
</compile_context>

<pallas_src>
import functools

import jax
import jax.numpy as jnp
from jax.experimental import pallas as pl
from jax.experimental.pallas import tpu as pltpu


def _cdiv(a, b):
    return -(-a // b)


def _round_up(a, b):
    return _cdiv(a, b) * b


def _snt_classifier_kernel(x_ref, invlen_ref, w1_ref, b1_ref, w2_ref, b2_ref,
                           o_ref, acc_ref, *, d_model, fold, ts_total, tt):
    # x_ref:      (bt, tt, fold*d_model)  streamed LSTM-output tile
    # invlen_ref: (bt, 1)                 precomputed 1/len
    # w1_ref:     (d_model, H)   b1_ref: (1, H)
    # w2_ref:     (H, C)         b2_ref: (1, C)
    # o_ref:      (bt, C)                 log-softmax class scores
    # acc_ref:    (bt, fold*d_model) f32  running time-sum (persists across t axis)
    t = pl.program_id(1)

    # ---- init accumulator at the first time step of each batch block ----
    @pl.when(t == 0)
    def _():
        acc_ref[...] = jnp.zeros_like(acc_ref)

    # ---- streaming time-sum (f32 accumulation; input may be bf16) ----
    x = x_ref[...].astype(jnp.float32)

    # Ragged time tail: edge-block contents past `ts_total` are unspecified, so they
    # MUST be zeroed before accumulation.  Static no-op when tt divides ts_total.
    if ts_total % tt != 0:
        valid = ts_total - t * tt          # >= tt for all non-edge blocks
        idx = jax.lax.broadcasted_iota(jnp.int32, (1, tt, x.shape[-1]), 1)
        x = jnp.where(idx < valid, x, 0.0)

    acc_ref[...] += jnp.sum(x, axis=1)

    # ---- finalize: MLP head + log_softmax, once per batch block ----
    @pl.when(t == pl.num_programs(1) - 1)
    def _():
        acc = acc_ref[...]
        # Un-fold the lane-dense accumulator back to (bt, d_model).
        pooled = acc[:, :d_model]
        for f in range(1, fold):
            pooled = pooled + acc[:, f * d_model:(f + 1) * d_model]
        # Mean pooling: multiply by precomputed 1/len (sum over ALL timesteps divided
        # by the true length -- identical to the PyTorch forward).
        pooled = pooled * invlen_ref[...]

        # hidden2class: Linear -> Sigmoid -> (Dropout p=0, identity) -> Linear
        h = jnp.dot(pooled, w1_ref[...], preferred_element_type=jnp.float32)
        h = jax.nn.sigmoid(h + b1_ref[...])
        logits = jnp.dot(h, w2_ref[...], preferred_element_type=jnp.float32)
        logits = logits + b2_ref[...]

        # log_softmax along the class axis.
        m = jnp.max(logits, axis=-1, keepdims=True)
        shifted = logits - m
        lse = jnp.log(jnp.sum(jnp.exp(shifted), axis=-1, keepdims=True))
        o_ref[...] = (shifted - lse).astype(o_ref.dtype)


def snt_classifier_forward(lstm_out, lens, w1, b1, w2, b2,
                           *,
                           batch_tile=128,
                           tile_bytes=8 * 1024 * 1024,
                           vmem_limit_bytes=40 * 1024 * 1024):
    """lstm_out: (B, T, D) f32/bf16; lens: (B,) int/float; returns (B, C) f32 log-probs."""
    B, T, D = lstm_out.shape
    H = w1.shape[1]
    C = w2.shape[1]
    itemsize = jnp.dtype(lstm_out.dtype).itemsize

    # Precompute 1/len in the wrapper; the kernel multiplies.
    # (No zero-length guard -- matches the PyTorch division.)
    inv_len = (1.0 / jnp.asarray(lens, dtype=jnp.float32)).reshape(B, 1)

    # ---- copy-free lane fold: pack `fold` consecutive timesteps along features so the
    #      streamed tile is 128 lanes wide when D < 128, but ONLY when no time padding
    #      (and hence no HBM copy) is needed.
    fold = 1
    if D < 128 and 128 % D == 0 and T % (128 // D) == 0:
        fold = 128 // D

    x = lstm_out
    Ts, Ds = T, D
    if fold > 1:
        Ts, Ds = T // fold, D * fold
        x = x.reshape(B, Ts, Ds)           # contiguous row-major: free (no HBM copy)

    # ---- batch tiling: >= 2 blocks whenever B >= 16 (v7x megacore), minimal padding.
    n_bb = _cdiv(B, batch_tile)
    if B >= 16:
        n_bb = max(n_bb, 2)
    bt = _round_up(_cdiv(B, n_bb), 8)
    n_bb = _cdiv(B, bt)
    b_total = n_bb * bt

    # Only pad the batch when a single block would exceed the array (tiny B, cheap);
    # otherwise the ragged last batch block is a normal Pallas edge block whose garbage
    # rows never reach valid output rows.
    pad_b = b_total - B if bt > B else 0
    if pad_b:
        x = jnp.pad(x, ((0, pad_b), (0, 0), (0, 0)))
    inv_len = jnp.pad(inv_len, ((0, b_total - B), (0, 0)))   # tiny (B,1) tensor

    # ---- time tile: multiple of 8 sublanes, sized so one streamed tile is ~tile_bytes.
    tt = max(8, (tile_bytes // (itemsize * bt * Ds)) // 8 * 8)
    if tt >= Ts:
        tt = Ts                             # single time block (block dim == full dim)
    n_tb = _cdiv(Ts, tt)

    b1_2d = b1.reshape(1, H)
    b2_2d = b2.reshape(1, C)

    out_rows = B + pad_b
    grid = (n_bb, n_tb)

    out = pl.pallas_call(
        functools.partial(_snt_classifier_kernel, d_model=D, fold=fold,
                          ts_total=Ts, tt=tt),
        out_shape=jax.ShapeDtypeStruct((out_rows, C), jnp.float32),
        grid=grid,
        in_specs=[
            # streamed LSTM-output tile (double-buffered by the Pallas pipeline)
            pl.BlockSpec((bt, tt, Ds), lambda b, t: (b, t, 0)),
            # per-example 1/len: block index constant over t -> one DMA per batch block
            pl.BlockSpec((bt, 1), lambda b, t: (b, 0)),
            # weights/biases: constant block index -> fetched once, VMEM resident
            pl.BlockSpec((D, H), lambda b, t: (0, 0)),
            pl.BlockSpec((1, H), lambda b, t: (0, 0)),
            pl.BlockSpec((H, C), lambda b, t: (0, 0)),
            pl.BlockSpec((1, C), lambda b, t: (0, 0)),
        ],
        out_specs=pl.BlockSpec((bt, C), lambda b, t: (b, 0)),
        scratch_shapes=[pltpu.VMEM((bt, Ds), jnp.float32)],
        compiler_params=pltpu.CompilerParams(
            dimension_semantics=("parallel", "arbitrary"),
            vmem_limit_bytes=vmem_limit_bytes,
        ),
    )(x, inv_len, w1, b1_2d, w2, b2_2d)

    return out[:B]


def init_params(key, hidden_dim, class_size, num_directions=2, initrange=0.2):
    """Deterministic uniform(-initrange, initrange) init, mirroring init_weights()."""
    D = num_directions * hidden_dim
    k1, k2, k3, k4 = jax.random.split(key, 4)
    w1 = jax.random.uniform(k1, (D, hidden_dim), jnp.float32, -initrange, initrange)
    b1 = jax.random.uniform(k2, (hidden_dim,), jnp.float32, -initrange, initrange)
    w2 = jax.random.uniform(k3, (hidden_dim, class_size), jnp.float32, -initrange, initrange)
    b2 = jax.random.uniform(k4, (class_size,), jnp.float32, -initrange, initrange)
    return w1, b1, w2, b2


if __name__ == "__main__":
    # Small shapes consistent with the module: bidirectional LSTM output.
    batch = 2
    seq_len = 8
    hidden_dim = 32
    class_size = 8
    num_directions = 2          # bidirectional=True
    D = num_directions * hidden_dim

    key = jax.random.PRNGKey(0)
    k_x, k_p = jax.random.split(key)
    lstm_out = jax.random.normal(k_x, (batch, seq_len, D), dtype=jnp.float32)
    lens = jnp.array([8, 5], dtype=jnp.int32)   # per-example true sequence lengths

    w1, b1, w2, b2 = init_params(k_p, hidden_dim, class_size, num_directions)

    out = snt_classifier_forward(lstm_out, lens, w1, b1, w2, b2)
    jax.block_until_ready(out)

    # Sanity check against plain-JAX reference of the same math.
    # NOTE: like the PyTorch module, this sums ALL timesteps then divides by the
    # true length (assumes padded timesteps of lstm_out are zero).
    pooled = jnp.sum(lstm_out, axis=1) / lens.astype(jnp.float32)[:, None]
    h = jax.nn.sigmoid(pooled @ w1 + b1)
    ref = jax.nn.log_softmax(h @ w2 + b2, axis=1)
    assert out.shape == (batch, class_size)
    assert jnp.allclose(out, ref, atol=1e-5, rtol=1e-5), "mismatch vs reference"

    print("KERNEL_OK")
</pallas_src>

<mosaic_0001>
module attributes {stable_mosaic.version = 11 : i64} {
  func.func @_snt_classifier_kernel(%arg0: i32, %arg1: i32, %arg2: memref<8x4x128xf32, #tpu.memory_space<vmem>>, %arg3: memref<8x1xf32, #tpu.memory_space<vmem>>, %arg4: memref<64x32xf32, #tpu.memory_space<vmem>>, %arg5: memref<1x32xf32, #tpu.memory_space<vmem>>, %arg6: memref<32x8xf32, #tpu.memory_space<vmem>>, %arg7: memref<1x8xf32, #tpu.memory_space<vmem>>, %arg8: memref<8x8xf32, #tpu.memory_space<vmem>>, %arg9: memref<8x128xf32, #tpu.memory_space<vmem>>) attributes {dimension_semantics = [#tpu.dimension_semantics<parallel>, #tpu.dimension_semantics<arbitrary>], iteration_bounds = array<i64: 1, 1>, scalar_prefetch = 0 : i64, scratch_operands = 1 : i64, tpu.core_type = #tpu.core_type<tc>, window_params = [{transform_indices = @transform_0, window_bounds = array<i64: 8, 4, 128>}, {transform_indices = @transform_1, window_bounds = array<i64: 8, 1>}, {pipeline_mode = #tpu.pipeline_mode<synchronous>, transform_indices = @transform_2, window_bounds = array<i64: 64, 32>}, {pipeline_mode = #tpu.pipeline_mode<synchronous>, transform_indices = @transform_3, window_bounds = array<i64: 1, 32>}, {pipeline_mode = #tpu.pipeline_mode<synchronous>, transform_indices = @transform_4, window_bounds = array<i64: 32, 8>}, {pipeline_mode = #tpu.pipeline_mode<synchronous>, transform_indices = @transform_5, window_bounds = array<i64: 1, 8>}, {transform_indices = @transform_6, window_bounds = array<i64: 8, 8>}]} {
    %c0_i32 = arith.constant 0 : i32
    %0 = arith.cmpi eq, %arg1, %c0_i32 : i32
    %1 = arith.extui %0 : i1 to i32
    %c0_i32_0 = arith.constant 0 : i32
    %2 = arith.cmpi ne, %1, %c0_i32_0 : i32
    scf.if %2 {
      %cst_9 = arith.constant 0.000000e+00 : f32
      %11 = vector.broadcast %cst_9 : f32 to vector<8x128xf32>
      %c0_10 = arith.constant 0 : index
      %c0_11 = arith.constant 0 : index
      %12 = vector.load %arg9[%c0_10, %c0_11] : memref<8x128xf32, #tpu.memory_space<vmem>>, vector<8x128xf32>
      tpu.vector_store %arg9[%c0_10, %c0_11], %11 {strides = array<i32>} : memref<8x128xf32, #tpu.memory_space<vmem>>, vector<8x128xf32>,
    } else {
    }
    %c0 = arith.constant 0 : index
    %c0_1 = arith.constant 0 : index
    %c0_2 = arith.constant 0 : index
    %3 = vector.load %arg2[%c0, %c0_1, %c0_2] : memref<8x4x128xf32, #tpu.memory_space<vmem>>, vector<8x4x128xf32>
    %c0_3 = arith.constant 0 : index
    %c0_4 = arith.constant 0 : index
    %4 = vector.load %arg9[%c0_3, %c0_4] : memref<8x128xf32, #tpu.memory_space<vmem>>, vector<8x128xf32>
    %cst = arith.constant dense<0.000000e+00> : vector<8x128xf32>
    %5 = vector.multi_reduction <add>, %3, %cst [1] : vector<8x4x128xf32> to vector<8x128xf32>
    %6 = arith.addf %4, %5 : vector<8x128xf32>
    %c0_5 = arith.constant 0 : index
    %c0_6 = arith.constant 0 : index
    %7 = vector.load %arg9[%c0_5, %c0_6] : memref<8x128xf32, #tpu.memory_space<vmem>>, vector<8x128xf32>
    tpu.vector_store %arg9[%c0_5, %c0_6], %6 {strides = array<i32>} : memref<8x128xf32, #tpu.memory_space<vmem>>, vector<8x128xf32>,
    %c0_i32_7 = arith.constant 0 : i32
    %8 = arith.cmpi eq, %arg1, %c0_i32_7 : i32
    %9 = arith.extui %8 : i1 to i32
    %c0_i32_8 = arith.constant 0 : i32
    %10 = arith.cmpi ne, %9, %c0_i32_8 : i32
    scf.if %10 {
      %c0_9 = arith.constant 0 : index
      %c0_10 = arith.constant 0 : index
      %11 = vector.load %arg9[%c0_9, %c0_10] : memref<8x128xf32, #tpu.memory_space<vmem>>, vector<8x128xf32>
      %12 = vector.extract_strided_slice %11 {offsets = [0, 0], sizes = [8, 64], strides = [1, 1]} : vector<8x128xf32> to vector<8x64xf32>
      %13 = vector.extract_strided_slice %11 {offsets = [0, 64], sizes = [8, 64], strides = [1, 1]} : vector<8x128xf32> to vector<8x64xf32>
      %14 = arith.addf %12, %13 : vector<8x64xf32>
      %c0_11 = arith.constant 0 : index
      %c0_12 = arith.constant 0 : index
      %15 = vector.load %arg3[%c0_11, %c0_12] : memref<8x1xf32, #tpu.memory_space<vmem>>, vector<8x1xf32>
      %16 = vector.broadcast %15 : vector<8x1xf32> to vector<8x64xf32>
      %17 = arith.mulf %14, %16 : vector<8x64xf32>
      %c0_13 = arith.constant 0 : index
      %c0_14 = arith.constant 0 : index
      %18 = vector.load %arg4[%c0_13, %c0_14] : memref<64x32xf32, #tpu.memory_space<vmem>>, vector<64x32xf32>
      %cst_15 = arith.constant dense<0.000000e+00> : vector<8x32xf32>
      %19 = tpu.matmul %17, %18, %cst_15 {dimension_numbers = #tpu.dot_dimension_numbers<[1], [0], [0], [1], [0, 0, 1, 1], [], []>} : vector<8x64xf32>, vector<64x32xf32>, vector<8x32xf32> -> vector<8x32xf32>
      %c0_16 = arith.constant 0 : index
      %c0_17 = arith.constant 0 : index
      %20 = vector.load %arg5[%c0_16, %c0_17] : memref<1x32xf32, #tpu.memory_space<vmem>>, vector<1x32xf32>
      %21 = vector.broadcast %20 : vector<1x32xf32> to vector<8x32xf32>
      %22 = arith.addf %19, %21 : vector<8x32xf32>
      %23 = arith.negf %22 : vector<8x32xf32>
      %24 = math.exp %23 : vector<8x32xf32>
      %cst_18 = arith.constant 1.000000e+00 : f32
      %25 = vector.broadcast %cst_18 : f32 to vector<8x32xf32>
      %26 = arith.addf %25, %24 : vector<8x32xf32>
      %27 = arith.divf %25, %26 : vector<8x32xf32>
      %c0_19 = arith.constant 0 : index
      %c0_20 = arith.constant 0 : index
      %28 = vector.load %arg6[%c0_19, %c0_20] : memref<32x8xf32, #tpu.memory_space<vmem>>, vector<32x8xf32>
      %cst_21 = arith.constant dense<0.000000e+00> : vector<8x8xf32>
      %29 = tpu.matmul %27, %28, %cst_21 {dimension_numbers = #tpu.dot_dimension_numbers<[1], [0], [0], [1], [0, 0, 1, 1], [], []>} : vector<8x32xf32>, vector<32x8xf32>, vector<8x8xf32> -> vector<8x8xf32>
      %c0_22 = arith.constant 0 : index
      %c0_23 = arith.constant 0 : index
      %30 = vector.load %arg7[%c0_22, %c0_23] : memref<1x8xf32, #tpu.memory_space<vmem>>, vector<1x8xf32>
      %31 = vector.broadcast %30 : vector<1x8xf32> to vector<8x8xf32>
      %32 = arith.addf %29, %31 : vector<8x8xf32>
      %cst_24 = arith.constant dense<0xFF800000> : vector<8xf32>
      %33 = vector.multi_reduction <maximumf>, %32, %cst_24 [1] : vector<8x8xf32> to vector<8xf32>
      %34 = vector.shape_cast %33 : vector<8xf32> to vector<8x1xf32>
      %35 = vector.broadcast %34 : vector<8x1xf32> to vector<8x8xf32>
      %36 = arith.subf %32, %35 : vector<8x8xf32>
      %37 = math.exp %36 : vector<8x8xf32>
      %cst_25 = arith.constant dense<0.000000e+00> : vector<8xf32>
      %38 = vector.multi_reduction <add>, %37, %cst_25 [1] : vector<8x8xf32> to vector<8xf32>
      %39 = vector.shape_cast %38 : vector<8xf32> to vector<8x1xf32>
      %40 = math.log %39 : vector<8x1xf32>
      %41 = vector.broadcast %40 : vector<8x1xf32> to vector<8x8xf32>
      %42 = arith.subf %36, %41 : vector<8x8xf32>
      %c0_26 = arith.constant 0 : index
      %c0_27 = arith.constant 0 : index
      %43 = vector.load %arg8[%c0_26, %c0_27] : memref<8x8xf32, #tpu.memory_space<vmem>>, vector<8x8xf32>
      tpu.vector_store %arg8[%c0_26, %c0_27], %42 {strides = array<i32>} : memref<8x8xf32, #tpu.memory_space<vmem>>, vector<8x8xf32>,
    } else {
    }
    return
  }
  func.func @transform_0(%arg0: i32, %arg1: i32) -> (i32, i32, i32) {
    %c0_i32 = arith.constant 0 : i32
    %c0_i32_0 = arith.constant 0 : i32
    return %arg0, %arg1, %c0_i32 : i32, i32, i32
  }
  func.func @transform_1(%arg0: i32, %arg1: i32) -> (i32, i32) {
    %c0_i32 = arith.constant 0 : i32
    %c0_i32_0 = arith.constant 0 : i32
    return %arg0, %c0_i32 : i32, i32
  }
  func.func @transform_2(%arg0: i32, %arg1: i32) -> (i32, i32) {
    %c0_i32 = arith.constant 0 : i32
    %c0_i32_0 = arith.constant 0 : i32
    %c0_i32_1 = arith.constant 0 : i32
    return %c0_i32, %c0_i32_0 : i32, i32
  }
  func.func @transform_3(%arg0: i32, %arg1: i32) -> (i32, i32) {
    %c0_i32 = arith.constant 0 : i32
    %c0_i32_0 = arith.constant 0 : i32
    %c0_i32_1 = arith.constant 0 : i32
    return %c0_i32, %c0_i32_0 : i32, i32
  }
  func.func @transform_4(%arg0: i32, %arg1: i32) -> (i32, i32) {
    %c0_i32 = arith.constant 0 : i32
    %c0_i32_0 = arith.constant 0 : i32
    %c0_i32_1 = arith.constant 0 : i32
    return %c0_i32, %c0_i32_0 : i32, i32
  }
  func.func @transform_5(%arg0: i32, %arg1: i32) -> (i32, i32) {
    %c0_i32 = arith.constant 0 : i32
    %c0_i32_0 = arith.constant 0 : i32
    %c0_i32_1 = arith.constant 0 : i32
    return %c0_i32, %c0_i32_0 : i32, i32
  }
  func.func @transform_6(%arg0: i32, %arg1: i32) -> (i32, i32) {
    %c0_i32 = arith.constant 0 : i32
    %c0_i32_0 = arith.constant 0 : i32
    return %arg0, %c0_i32 : i32, i32
  }
}

</mosaic_0001>

<bundles_post_ra>
// kernel: tpu_custom_call.1
= control target key start
LH: loop header
LB: loop body
LE: loop exit
PB: predicated region body
PF: predicated region fallthrough
CT: control target
= control target key end

     0   :  { %vm38_vm0 = vcmask 1043456   ;;  %vm103_vm1 = vcmask 1041409   ;;  %s410_s0 = inlined_call_operand.vmem [shape: f32[8,4,128], index: 0, kind: input, shape index: {}]   ;;  %s411_s1 = inlined_call_operand.vmem [shape: f32[8,1], index: 1, kind: input, shape index: {}]   ;;  %s412_s2 = inlined_call_operand.vmem [shape: f32[64,32], index: 2, kind: input, shape index: {}]   ;;  %s413_s3 = inlined_call_operand.vmem [shape: f32[1,32], index: 3, kind: input, shape index: {}]   ;;  %s414_s4 = inlined_call_operand.vmem [shape: f32[32,8], index: 4, kind: input, shape index: {}]   ;;  %s415_s5 = inlined_call_operand.vmem [shape: f32[1,8], index: 5, kind: input, shape index: {}]   ;;  %s416_s6 = inlined_call_operand.hbm [shape: f32[8,8], index: 6, kind: output, shape index: {}]  }
   0x1   :  { %v29_v0 = vld [vmem:[%s410_s0] sm:$0xf]  ;;  %v30_v1 = vld [vmem:[%s410_s0 + $0x4] sm:$0xf]  ;;  %v31_v2 = vld [vmem:[%s410_s0 + $0x8] sm:$0xf] }
   0x2   :  { %v32_v3 = vld [vmem:[%s410_s0 + $0xc] sm:$0xf]  ;;  %v33_v4 = vld [vmem:[%s410_s0 + $0x10] sm:$0xf]  ;;  %v34_v5 = vld [vmem:[%s410_s0 + $0x14] sm:$0xf] }
   0x3   :  { %v35_v6 = vld [vmem:[%s410_s0 + $0x18] sm:$0xf]  ;;  %v36_v7 = vld [vmem:[%s410_s0 + $0x1c] sm:$0xf]  ;;  %v39_v8 = vsel %vm38_vm0, %v29_v0, 0.0  ;;  %v46_v9 = vsel %vm38_vm0, %v30_v1, 0.0 }
   0x4   :  { %v53_v10 = vsel %vm38_vm0, %v31_v2, 0.0  ;;  %v60_v11 = vsel %vm38_vm0, %v32_v3, 0.0  ;;  %v40_v12 = vrot.slane %v39_v8, 4  ;;  %v47_v13 = vrot.slane %v46_v9, 4  ;;  %v143_v16 = vld [vmem:[%s412_s2 + $0x38] sm:$0xff]  ;;  %v142_v17 = vld [vmem:[%s412_s2 + $0x30] sm:$0xff] }
   0x5   :  { %v54_v14 = vrot.slane %v53_v10, 4  ;;  %v61_v15 = vrot.slane %v60_v11, 4  ;;  %v67_v18 = vsel %vm38_vm0, %v33_v4, 0.0  ;;  %v74_v19 = vsel %vm38_vm0, %v34_v5, 0.0  ;;  %160 = vmatpush.msra.mxu0 %v143_v16  ;;  %v141_v22 = vld [vmem:[%s412_s2 + $0x28] sm:$0xff] }
   0x6   :  { %v81_v20 = vsel %vm38_vm0, %v35_v6, 0.0  ;;  %v88_v21 = vsel %vm38_vm0, %v36_v7, 0.0  ;;  %v41_v23 = vadd.f32 %v40_v12, %v39_v8  ;;  %v48_v24 = vadd.f32 %v47_v13, %v46_v9 }
   0x7   :  { %v55_v25 = vadd.f32 %v54_v14, %v53_v10  ;;  %v62_v26 = vadd.f32 %v61_v15, %v60_v11 }
   0x8   :  { %11 = vsyncpa [#allocation4], 0  ;;  %v68_v27 = vrot.slane %v67_v18, 4  ;;  %v75_v28 = vrot.slane %v74_v19, 4  ;;  %v82_v29 = vrot.slane %v81_v20, 4  ;;  %v89_v30 = vrot.slane %v88_v21, 4  ;;  %161 = vmatpush.msra.mxu0 %v142_v17 }
   0x9   :  { %v42_v31 = vrot.slane %v41_v23, 2  ;;  %v49_v32 = vrot.slane %v48_v24, 2  ;;  %v56_v33 = vrot.slane %v55_v25, 2  ;;  %v63_v34 = vrot.slane %v62_v26, 2  ;;  %s297_s18 = smov 64   ;;  %v129_v11 = vld [vmem:[%s411_s1] sm:$0xff] }
   0xa   :  { %v69_v35 = vadd.f32 %v68_v27, %v67_v18  ;;  %v76_v36 = vadd.f32 %v75_v28, %v74_v19  ;;  %v83_v37 = vadd.f32 %v82_v29, %v81_v20  ;;  %v90_v38 = vadd.f32 %v89_v30, %v88_v21  ;;  %162 = vmatpush.msra.mxu0 %v141_v22  ;;  %v140_v12 = vld [vmem:[%s412_s2 + $0x20] sm:$0xff]  ;;  %v139_v13 = vld [vmem:[%s412_s2 + $0x18] sm:$0xff]  ;;  %v138_v14 = vld [vmem:[%s412_s2 + $0x10] sm:$0xff]  ;;  %s298_s15 = smov [#allocation3]   ;;  %s244_s17 = sshll.u32 %s416_s6, 4  ;;  %s245_s17 = int_to_ptr.hbm [resolvable:$true] %s244_s17 }
   0xb   :  { %v43_v39 = vadd.f32 %v42_v31, %v41_v23  ;;  %v50_v40 = vadd.f32 %v49_v32, %v48_v24  ;;  %v57_v41 = vadd.f32 %v56_v33, %v55_v25  ;;  %v64_v42 = vadd.f32 %v63_v34, %v62_v26  ;;  %v137_v15 = vld [vmem:[%s412_s2 + $0x8] sm:$0xff]  ;;  %v136_v16 = vld [vmem:[%s412_s2] sm:$0xff]  ;;  %v194_v21 = vld [vmem:[%s414_s4 + $0x18] sm:$0xff]  ;;  %s242_s16 = sshll.u32 %s298_s15, 4  ;;  %s243_s16 = int_to_ptr.vmem [resolvable:$true] %s242_s16 }
   0xc   :  { %v70_v43 = vrot.slane %v69_v35, 2  ;;  %v77_v44 = vrot.slane %v76_v36, 2  ;;  %v84_v45 = vrot.slane %v83_v37, 2  ;;  %v91_v46 = vrot.slane %v90_v38, 2  ;;  %163 = vmatpush.msra.mxu0 %v140_v12  ;;  %v193_v22 = vld [vmem:[%s414_s4 + $0x10] sm:$0xff]  ;;  %215 = vmatpush.msra.mxu1 %v194_v21  ;;  %v192_v23 = vld [vmem:[%s414_s4 + $0x8] sm:$0xff] }
   0xd   :  { %v44_v47 = vrot.slane %v43_v39, 1  ;;  %v51_v48 = vrot.slane %v50_v40, 1  ;;  %v58_v49 = vrot.slane %v57_v41, 1  ;;  %v65_v50 = vrot.slane %v64_v42, 1  ;;  %v191_v24 = vld [vmem:[%s414_s4] sm:$0xff] }
   0xe   :  { %v71_v51 = vadd.f32 %v70_v43, %v69_v35  ;;  %v78_v52 = vadd.f32 %v77_v44, %v76_v36  ;;  %v85_v53 = vadd.f32 %v84_v45, %v83_v37  ;;  %v92_v54 = vadd.f32 %v91_v46, %v90_v38  ;;  %164 = vmatpush.msra.mxu0 %v139_v13  ;;  %v260_v25 = vld [vmem:[%s413_s3] ss:$0 sm:$0xff] }
   0xf   :  { %v45_v55 = vadd.f32 %v44_v47, %v43_v39  ;;  %v52_v56 = vadd.f32 %v51_v48, %v50_v40  ;;  %v59_v57 = vadd.f32 %v58_v49, %v57_v41  ;;  %v66_v58 = vadd.f32 %v65_v50, %v64_v42  ;;  %216 = vmatpush.msra.mxu1 %v193_v22  ;;  %v261_v41 = vld [vmem:[%s415_s5] ss:$0 sm:$0xff] }
  0x10   :  { %v72_v59 = vrot.slane %v71_v51, 1  ;;  %v79_v60 = vrot.slane %v78_v52, 1  ;;  %v86_v61 = vrot.slane %v85_v53, 1  ;;  %v93_v62 = vrot.slane %v92_v54, 1  ;;  %165 = vmatpush.msra.mxu0 %v138_v14 }
  0x11   :  { %v104_v63 = vsel %vm103_vm1, %v52_v56, %v45_v55  ;;  %vm105_vm2 = vcmask 1042434   ;;  %vm107_vm3 = vcmask 1043459   ;;  %vm109_vm4 = vcmask 1044484   ;;  %217 = vmatpush.msra.mxu1 %v192_v23 }
  0x12   :  { %v73_v0 = vadd.f32 %v72_v59, %v71_v51  ;;  %v80_v1 = vadd.f32 %v79_v60, %v78_v52  ;;  %v87_v2 = vadd.f32 %v86_v61, %v85_v53  ;;  %v106_v3 = vsel %vm105_vm2, %v59_v57, %v104_v63  ;;  %166 = vmatpush.msra.mxu0 %v137_v15 }
  0x13   :  { %vm111_vm5 = vcmask 1045509   ;;  %v94_v4 = vadd.f32 %v93_v62, %v92_v54  ;;  %v108_v5 = vsel %vm107_vm3, %v66_v58, %v106_v3  ;;  %vm113_vm6 = vcmask 1046534   ;;  %218 = vmatpush.msra.mxu1 %v191_v24 }
  0x14   :  { %v110_v6 = vsel %vm109_vm4, %v73_v0, %v108_v5  ;;  %vm115_vm7 = vcmask 1047559   ;;  %v296_v7 = vmov 0   ;;  %167 = vmatpush.msra.mxu0 %v136_v16  ;;  %vm148_vm8 = vcmask 523264  }
  0x15   :  { %259 = vset.pattern.permute.xlu0 %v296_v7  ;;  %v112_v8 = vsel %vm111_vm5, %v80_v1, %v110_v6  ;;  %vm199_vm12 = vcmask 261120   ;;  %vm223_vm14 = vcmask 64512  }
  0x16   :  { %v114_v9 = vsel %vm113_vm6, %v87_v2, %v112_v8 }
  0x17   :  { %v116_v10 = vsel %vm115_vm7, %v94_v4, %v114_v9 }
  0x18   :  { %125 = vrot.lane.b32.xlu0 %v116_v10, %s297_s18 }
  0x20   :  { %132 = vperm.xlu0 %259, %v129_v11  }
  0x8a   :  { %v126_v17 = vpop.permute.xlu0 %125 }
  0x8b   :  { %v128_v18 = vadd.f32 %v126_v17, %v116_v10 }
  0x92   :  { %v133_v19 = vpop.permute.xlu0 %132 }
  0x93   :  { %v135_v20 = vmul.f32 %v133_v19, %v128_v18 }
  0x95   :  { %253 = vmatmul.msk.f32.vlgmr.msra.gmra.mxu0 %vm148_vm8, %v135_v20 }
 0x112   :  { %v169_v26 = vpop.f32.mrf.mxu0 }
 0x113   :  { %v170_v27 = vadd.f32 %v260_v25, %v169_v26 }
 0x115   :  { %v254_v28 = vmul.f32 -1.442695, %v170_v27 }
 0x117   :  { %262 = vpow2.f32 %v254_v28 }
 0x11d   :  { %v263_v29 = vpop.eup %262 }
 0x11e   :  { %v175_v30 = vadd.f32 1.0, %v263_v29 }
 0x120   :  { %264 = vrcp.f32 %v175_v30  ;;  %v187_v34 = vand.u32 2147483648, %v175_v30  ;;  %v185_v36 = vand.u32 2147483647, %v175_v30  ;;  %vm181_vm10 = vweird.f32 %v175_v30 }
 0x122   :  { %v188_v38 = vor.u32 1.1754944e-38, %v187_v34  ;;  %vm186_vm13 = vcmp.eq.f32.partialorder %v185_v36, 8.507059e+37 }
 0x126   :  { %v265_v31 = vpop.eup %264 }
 0x127   :  { %v177_v32 = vmul.f32 %v265_v31, %v175_v30  ;;  %vm182_vm9 = vweird.f32 %v265_v31 }
 0x128   :  { %vm183_vm11 = vmor %vm181_vm10, %vm182_vm9 }
 0x129   :  { %v178_v33 = vsub.f32 1.0, %v177_v32 }
 0x12b   :  { %v179_v35 = vmul.f32 %v265_v31, %v178_v33 }
 0x12d   :  { %v180_v37 = vadd.f32 %v265_v31, %v179_v35 }
 0x12f   :  { %v184_v39 = vsel %vm183_vm11, %v265_v31, %v180_v37 }
 0x130   :  { %v189_v40 = vsel %vm186_vm13, %v188_v38, %v184_v39 }
 0x131   :  { %255 = vmatmul.msk.f32.vlgmr.msra.gmra.mxu1 %vm199_vm12, %v189_v40 }
 0x1ae   :  { %v220_v42 = vpop.f32.mrf.mxu1 }
 0x1af   :  { %v221_v43 = vadd.f32 %v261_v41, %v220_v42 }
 0x1b1   :  { %v224_v44 = vsel %vm223_vm14, %v221_v43, -inf }
 0x1b2   :  { %225 = vmax.xlane.f32.xlu1 %v224_v44 }
 0x225   :  { %v226_v45 = vpop.xlane.xlu1 %225 }
 0x226   :  { %v227_v46 = vsub.f32 %v221_v43, %v226_v45 }
 0x228   :  { %v228_v47 = vmul.f32 1.442695, %v227_v46 }
 0x22a   :  { %266 = vpow2.f32 %v228_v47 }
 0x230   :  { %v267_v48 = vpop.eup %266 }
 0x231   :  { %v230_v49 = vsel %vm223_vm14, %v267_v48, 0.0 }
 0x232   :  { %231 = vadd.xlane.f32.xlu1 %v230_v49 }
 0x2a5   :  { %v232_v50 = vpop.xlane.xlu1 %231 }
 0x2a6   :  { %268 = vlog2.f32 %v232_v50 }
 0x2ac   :  { %v269_v51 = vpop.eup %268 }
 0x2ad   :  { %v234_v52 = vmul.f32 0.6931472, %v269_v51 }
 0x2af   :  { %v235_v53 = vsub.f32 %v227_v46, %v234_v52 }
 0x2b1   :  { %236 = vst.msk [vmem:[#allocation3] sm:$0xff] %vm223_vm14, %v235_v53 }
 0x2b2   :  { %247 = dma.vmem_to_hbm [thread:$0]  %s243_s16, 128, %s245_s17, [#allocation4]  }
 0x2b3   :  { %294 = dma.done.wait [#allocation4], 128  }
 0x2b4   :  { %295 = vsyncadd [#allocation4], 4294967168 }
 0x2b5   :  { %252 = vsyncpa [#allocation4], 1 }

</bundles_post_ra>
